<compile_context>
chip_gen: v6e
topology: v6e:2x2x1
jax: 0.10.0
libtpu: 0.0.40
codegen_flags: <defaults>
</compile_context>

<pallas_src>
import functools

import jax
import jax.numpy as jnp
from jax.experimental import pallas as pl
from jax.experimental.pallas import tpu as pltpu

_EPS = 1e-5  # PyTorch InstanceNorm2d default eps


def _conv3x3_in_relu(x, w_ref, slab_ref, masks, *, W, padding_type, eps):
    """pad(1) -> conv3x3 -> InstanceNorm (no affine) -> ReLU on a lane-dense plane.

    x:        (Ci, H*W) float32 value (already in VMEM / vregs)
    w_ref:    (Co, 9*Ci) bf16 VMEM ref, merged-K layout: column index = t*Ci + ci,
              tap t = dh*3 + dw
    slab_ref: (9*Ci, H*W) f32 VMEM scratch reused by both branches
    masks:    (w_first, w_last, h_first, h_last) boolean (1, H*W) boundary masks
    """
    Ci, HW = x.shape
    w_first, w_last, h_first, h_last = masks

    # ---- column-shifted variants (value at w-1 / w / w+1 with padding) -------
    prev_w = pltpu.roll(x, shift=1, axis=1)        # [p] = x[p-1]  -> value at w-1 (interior)
    next_w = pltpu.roll(x, shift=HW - 1, axis=1)   # [p] = x[p+1]  -> value at w+1 (interior)
    if padding_type == "reflect":
        left_edge, right_edge = next_w, prev_w
    elif padding_type == "replicate":
        left_edge, right_edge = x, x
    elif padding_type == "zero":
        z = jnp.zeros_like(x)
        left_edge, right_edge = z, z
    else:
        raise NotImplementedError(f"padding [{padding_type}] is not implemented")
    cols = (jnp.where(w_first, left_edge, prev_w),   # dw = 0
            x,                                       # dw = 1
            jnp.where(w_last, right_edge, next_w))   # dw = 2

    # ---- row shifts per column variant -> 9 taps written into the slab -------
    for dw in range(3):
        cv = cols[dw]
        prev_h = pltpu.roll(cv, shift=W, axis=1)       # value at h-1 (interior)
        next_h = pltpu.roll(cv, shift=HW - W, axis=1)  # value at h+1 (interior)
        if padding_type == "reflect":
            top_edge, bot_edge = next_h, prev_h
        elif padding_type == "replicate":
            top_edge, bot_edge = cv, cv
        else:  # zero
            top_edge = bot_edge = jnp.zeros_like(cv)
        slab_ref[(0 * 3 + dw) * Ci:(0 * 3 + dw + 1) * Ci, :] = jnp.where(h_first, top_edge, prev_h)
        slab_ref[(1 * 3 + dw) * Ci:(1 * 3 + dw + 1) * Ci, :] = cv
        slab_ref[(2 * 3 + dw) * Ci:(2 * 3 + dw + 1) * Ci, :] = jnp.where(h_last, bot_edge, next_h)

    # ---- single merged-K matmul: bf16 operands, f32 accumulation --------------
    conv = jnp.dot(w_ref[...], slab_ref[...].astype(w_ref.dtype),
                   preferred_element_type=jnp.float32)            # (Co, HW) f32

    # ---- InstanceNorm2d (affine=False, biased var), single-pass stats + ReLU --
    inv_n = jnp.float32(1.0 / HW)
    mean = jnp.sum(conv, axis=1, keepdims=True) * inv_n
    ex2 = jnp.sum(conv * conv, axis=1, keepdims=True) * inv_n
    var = jnp.maximum(ex2 - mean * mean, 0.0)                     # guard cancellation
    return jnp.maximum((conv - mean) * jax.lax.rsqrt(var + eps), 0.0)


def _rev_block_kernel(x_ref, wf_ref, wg_ref, o_ref, slab_ref,
                      *, H, W, padding_type, eps):
    C = x_ref.shape[1]
    Ch = C // 2
    HW = H * W

    # Boundary masks on the flattened spatial axis, shared by F and G (hoisted).
    pos = jax.lax.broadcasted_iota(jnp.int32, (1, HW), 1)
    if (W & (W - 1)) == 0:                       # power-of-two width: div-free masks
        col = jnp.bitwise_and(pos, W - 1)
    else:
        col = pos % W
    masks = (col == 0, col == W - 1, pos < W, pos >= HW - W)

    x = x_ref[0].astype(jnp.float32)             # (C, HW); cast hoisted (no-op for f32)
    x1, x2 = x[:Ch], x[Ch:]

    # y1 = x1 + F(x2)
    f_out = _conv3x3_in_relu(x2, wf_ref, slab_ref, masks,
                             W=W, padding_type=padding_type, eps=eps)
    y1 = x1 + f_out                              # stays in VMEM/vregs, never hits HBM

    # y2 = x2 + G(y1)
    g_out = _conv3x3_in_relu(y1, wg_ref, slab_ref, masks,
                             W=W, padding_type=padding_type, eps=eps)
    y2 = x2 + g_out

    # Lane-dense (last dim = H*W) unmasked stores; the channel concat falls out of layout.
    o_ref[0, 0] = y1.astype(o_ref.dtype)
    o_ref[0, 1] = y2.astype(o_ref.dtype)


def reversible_conv_block_forward(x, wF, bF, wG, bG, *,
                                  padding_type="reflect", eps=_EPS):
    """Forward of ReversibleConvBlock (additive coupling, InstanceNorm, 3x3 convs)."""
    B, C, H, W = x.shape
    assert C % 2 == 0, "dim must be even"
    Ch = C // 2
    assert wF.shape == (Ch, Ch, 3, 3) and wG.shape == (Ch, Ch, 3, 3), \
        "kernel_size is fixed to 3"
    if padding_type not in ("reflect", "replicate", "zero"):
        raise NotImplementedError(f"padding [{padding_type}] is not implemented")
    HW = H * W

    # Merged-K weight layout (Co, 9*Ci), column index = (dh*3+dw)*Ci + ci, in bf16 so
    # the MXU sees bf16 x bf16 operands (accumulation stays f32 inside the kernel).
    wf_m = jnp.transpose(wF, (0, 2, 3, 1)).reshape(Ch, 9 * Ch).astype(jnp.bfloat16)
    wg_m = jnp.transpose(wG, (0, 2, 3, 1)).reshape(Ch, 9 * Ch).astype(jnp.bfloat16)
    # bF / bG are intentionally unused: InstanceNorm2d(affine=False) subtracts the
    # per-channel mean, so a per-channel conv bias is mathematically cancelled.
    del bF, bG

    # Lane-dense presentation of the activations: last dim = H*W (>= 128).
    xf = x.reshape(B, C, HW)

    kernel = functools.partial(_rev_block_kernel, H=H, W=W,
                               padding_type=padding_type, eps=eps)

    itemsize = x.dtype.itemsize
    cost = pl.CostEstimate(
        flops=int(B * 2 * 2 * Ch * (9 * Ch) * HW),     # two merged-K 3x3 convs
        transcendentals=int(B * 2 * Ch),               # one rsqrt per (batch, channel, conv)
        bytes_accessed=int(2 * x.size * itemsize + 2 * (wf_m.size + wg_m.size) * 2),
    )

    # Explicit VMEM budget: >= 32 MiB scoped default, capped safely below v7x's
    # 64 MiB/TC physical VMEM (v5e/v6e have 128 MiB so the cap is safe there too).
    blk_io_bytes = 2 * C * HW * itemsize                       # one input + one output block
    w_bytes = (wf_m.size + wg_m.size) * 2                      # bf16 weights
    slab_bytes = 9 * Ch * HW * 4                               # f32 tap scratch
    live_bytes = 10 * Ch * HW * 4                              # rough bound on live temporaries
    need = 2 * blk_io_bytes + 2 * w_bytes + slab_bytes + live_bytes
    vmem_limit = int(min(max(2 * need, 32 * 1024 * 1024), 56 * 1024 * 1024))

    out = pl.pallas_call(
        kernel,
        out_shape=jax.ShapeDtypeStruct((B, 2, Ch, HW), x.dtype),
        grid=(B,),                                             # B >= 2 keeps both v7x TCs busy
        in_specs=[
            pl.BlockSpec((1, C, HW), lambda b: (b, 0, 0)),     # x (both halves)
            pl.BlockSpec((Ch, 9 * Ch), lambda b: (0, 0)),      # F weights (VMEM resident)
            pl.BlockSpec((Ch, 9 * Ch), lambda b: (0, 0)),      # G weights (VMEM resident)
        ],
        out_specs=pl.BlockSpec((1, 2, Ch, HW), lambda b: (b, 0, 0, 0)),
        scratch_shapes=[pltpu.VMEM((9 * Ch, HW), jnp.float32)],  # shared tap slab
        compiler_params=pltpu.CompilerParams(
            dimension_semantics=("parallel",),
            vmem_limit_bytes=vmem_limit),
        cost_estimate=cost,
    )(xf, wf_m, wg_m)

    # (B, 2, Ch, H*W) -> (B, C, H, W): zero-cost wrapper reshape (the channel concat
    # of [y1, y2] falls out of the layout).
    return out.reshape(B, C, H, W)


# ----------------------------- pure-JAX reference ------------------------------
def _conv_block_ref(x, w, b, padding_type, eps=_EPS):
    mode = {"reflect": "reflect", "replicate": "edge", "zero": "constant"}[padding_type]
    xp = jnp.pad(x, ((0, 0), (0, 0), (1, 1), (1, 1)), mode=mode)
    y = jax.lax.conv_general_dilated(
        xp, w, window_strides=(1, 1), padding="VALID",
        dimension_numbers=("NCHW", "OIHW", "NCHW"))
    if b is not None:
        y = y + b[None, :, None, None]
    m = jnp.mean(y, axis=(2, 3), keepdims=True)
    v = jnp.mean((y - m) ** 2, axis=(2, 3), keepdims=True)
    return jnp.maximum((y - m) * jax.lax.rsqrt(v + eps), 0.0)


def reversible_conv_block_ref(x, wF, bF, wG, bG, *, padding_type="reflect"):
    Ch = x.shape[1] // 2
    x1, x2 = x[:, :Ch], x[:, Ch:]
    y1 = x1 + _conv_block_ref(x2, wF, bF, padding_type)
    y2 = x2 + _conv_block_ref(y1, wG, bG, padding_type)
    return jnp.concatenate([y1, y2], axis=1)


if __name__ == "__main__":
    key = jax.random.PRNGKey(0)
    k1, k2, k3, k4, k5 = jax.random.split(key, 5)

    B, C, H, W = 2, 4, 16, 16        # dim=4 -> each branch works on dim//2 = 2 channels
    Ch = C // 2
    x = jax.random.normal(k1, (B, C, H, W), dtype=jnp.float32)
    wF = 0.2 * jax.random.normal(k2, (Ch, Ch, 3, 3), dtype=jnp.float32)
    bF = 0.1 * jax.random.normal(k3, (Ch,), dtype=jnp.float32)
    wG = 0.2 * jax.random.normal(k4, (Ch, Ch, 3, 3), dtype=jnp.float32)
    bG = 0.1 * jax.random.normal(k5, (Ch,), dtype=jnp.float32)

    out = reversible_conv_block_forward(x, wF, bF, wG, bG, padding_type="reflect")
    out = jax.block_until_ready(out)

    ref = reversible_conv_block_ref(x, wF, bF, wG, bG, padding_type="reflect")
    assert out.shape == (B, C, H, W), out.shape
    assert out.dtype == x.dtype
    assert bool(jnp.all(jnp.isfinite(out)))
    # Loose tolerance: the kernel feeds bf16 operands to the MXU (f32 accumulation) and
    # drops the (InstanceNorm-cancelled) conv bias, so bit-exactness vs the f32 XLA
    # reference is not expected.
    assert bool(jnp.allclose(out, ref, atol=5e-2, rtol=5e-2)), \
        float(jnp.max(jnp.abs(out - ref)))

    print("KERNEL_OK")
</pallas_src>

<mosaic_0001>
module attributes {stable_mosaic.version = 11 : i64} {
  func.func @_rev_block_kernel(%arg0: i32, %arg1: memref<1x4x256xf32, #tpu.memory_space<vmem>>, %arg2: memref<2x18xbf16, #tpu.memory_space<vmem>>, %arg3: memref<2x18xbf16, #tpu.memory_space<vmem>>, %arg4: memref<1x2x2x256xf32, #tpu.memory_space<vmem>>, %arg5: memref<18x256xf32, #tpu.memory_space<vmem>>) attributes {dimension_semantics = [#tpu.dimension_semantics<parallel>], iteration_bounds = array<i64: 2>, scalar_prefetch = 0 : i64, scratch_operands = 1 : i64, tpu.core_type = #tpu.core_type<tc>, window_params = [{transform_indices = @transform_0, window_bounds = array<i64: 1, 4, 256>}, {pipeline_mode = #tpu.pipeline_mode<synchronous>, transform_indices = @transform_1, window_bounds = array<i64: 2, 18>}, {pipeline_mode = #tpu.pipeline_mode<synchronous>, transform_indices = @transform_2, window_bounds = array<i64: 2, 18>}, {transform_indices = @transform_3, window_bounds = array<i64: 1, 2, 2, 256>}]} {
    %0 = tpu.iota {dimensions = array<i32: 1>} : vector<1x256xi32>
    %c15_i32 = arith.constant 15 : i32
    %1 = vector.broadcast %c15_i32 : i32 to vector<1x256xi32>
    %2 = arith.andi %0, %1 : vector<1x256xi32>
    %c0_i32 = arith.constant 0 : i32
    %3 = vector.broadcast %c0_i32 : i32 to vector<1x256xi32>
    %4 = arith.cmpi eq, %2, %3 : vector<1x256xi32>
    %c15_i32_0 = arith.constant 15 : i32
    %5 = vector.broadcast %c15_i32_0 : i32 to vector<1x256xi32>
    %6 = arith.cmpi eq, %2, %5 : vector<1x256xi32>
    %c16_i32 = arith.constant 16 : i32
    %7 = vector.broadcast %c16_i32 : i32 to vector<1x256xi32>
    %8 = arith.cmpi slt, %0, %7 : vector<1x256xi32>
    %c240_i32 = arith.constant 240 : i32
    %9 = vector.broadcast %c240_i32 : i32 to vector<1x256xi32>
    %10 = arith.cmpi sge, %0, %9 : vector<1x256xi32>
    %c0 = arith.constant 0 : index
    %c0_1 = arith.constant 0 : index
    %c0_2 = arith.constant 0 : index
    %11 = vector.load %arg1[%c0, %c0_1, %c0_2] : memref<1x4x256xf32, #tpu.memory_space<vmem>>, vector<1x4x256xf32>
    %12 = vector.shape_cast %11 : vector<1x4x256xf32> to vector<4x256xf32>
    %13 = vector.extract_strided_slice %12 {offsets = [0, 0], sizes = [2, 256], strides = [1, 1]} : vector<4x256xf32> to vector<2x256xf32>
    %14 = vector.extract_strided_slice %12 {offsets = [2, 0], sizes = [2, 256], strides = [1, 1]} : vector<4x256xf32> to vector<2x256xf32>
    %c1_i32 = arith.constant 1 : i32
    %15 = tpu.dynamic_rotate %14 by %c1_i32 dim 1 : vector<2x256xf32>, i32 -> vector<2x256xf32>
    %c255_i32 = arith.constant 255 : i32
    %16 = tpu.dynamic_rotate %14 by %c255_i32 dim 1 : vector<2x256xf32>, i32 -> vector<2x256xf32>
    %17 = vector.shape_cast %4 : vector<1x256xi1> to vector<1x256xi1>
    %18 = vector.broadcast %17 : vector<1x256xi1> to vector<2x256xi1>
    %19 = arith.select %18, %16, %15 : vector<2x256xi1>, vector<2x256xf32>
    %20 = vector.shape_cast %6 : vector<1x256xi1> to vector<1x256xi1>
    %21 = vector.broadcast %20 : vector<1x256xi1> to vector<2x256xi1>
    %22 = arith.select %21, %15, %16 : vector<2x256xi1>, vector<2x256xf32>
    %c16_i32_3 = arith.constant 16 : i32
    %23 = tpu.dynamic_rotate %19 by %c16_i32_3 dim 1 : vector<2x256xf32>, i32 -> vector<2x256xf32>
    %c240_i32_4 = arith.constant 240 : i32
    %24 = tpu.dynamic_rotate %19 by %c240_i32_4 dim 1 : vector<2x256xf32>, i32 -> vector<2x256xf32>
    %25 = vector.shape_cast %8 : vector<1x256xi1> to vector<1x256xi1>
    %26 = vector.broadcast %25 : vector<1x256xi1> to vector<2x256xi1>
    %27 = arith.select %26, %24, %23 : vector<2x256xi1>, vector<2x256xf32>
    %c0_5 = arith.constant 0 : index
    %c0_6 = arith.constant 0 : index
    %28 = vector.load %arg5[%c0_5, %c0_6] : memref<18x256xf32, #tpu.memory_space<vmem>>, vector<2x256xf32>
    tpu.vector_store %arg5[%c0_5, %c0_6], %27 {strides = array<i32>} : memref<18x256xf32, #tpu.memory_space<vmem>>, vector<2x256xf32>,
    %c6 = arith.constant 6 : index
    %c0_7 = arith.constant 0 : index
    %29 = vector.load %arg5[%c6, %c0_7] : memref<18x256xf32, #tpu.memory_space<vmem>>, vector<2x256xf32>
    tpu.vector_store %arg5[%c6, %c0_7], %19 {strides = array<i32>} : memref<18x256xf32, #tpu.memory_space<vmem>>, vector<2x256xf32>,
    %30 = vector.shape_cast %10 : vector<1x256xi1> to vector<1x256xi1>
    %31 = vector.broadcast %30 : vector<1x256xi1> to vector<2x256xi1>
    %32 = arith.select %31, %23, %24 : vector<2x256xi1>, vector<2x256xf32>
    %c12 = arith.constant 12 : index
    %c0_8 = arith.constant 0 : index
    %33 = vector.load %arg5[%c12, %c0_8] : memref<18x256xf32, #tpu.memory_space<vmem>>, vector<2x256xf32>
    tpu.vector_store %arg5[%c12, %c0_8], %32 {strides = array<i32>} : memref<18x256xf32, #tpu.memory_space<vmem>>, vector<2x256xf32>,
    %c16_i32_9 = arith.constant 16 : i32
    %34 = tpu.dynamic_rotate %14 by %c16_i32_9 dim 1 : vector<2x256xf32>, i32 -> vector<2x256xf32>
    %c240_i32_10 = arith.constant 240 : i32
    %35 = tpu.dynamic_rotate %14 by %c240_i32_10 dim 1 : vector<2x256xf32>, i32 -> vector<2x256xf32>
    %36 = vector.shape_cast %8 : vector<1x256xi1> to vector<1x256xi1>
    %37 = vector.broadcast %36 : vector<1x256xi1> to vector<2x256xi1>
    %38 = arith.select %37, %35, %34 : vector<2x256xi1>, vector<2x256xf32>
    %c2 = arith.constant 2 : index
    %c0_11 = arith.constant 0 : index
    %39 = vector.load %arg5[%c2, %c0_11] : memref<18x256xf32, #tpu.memory_space<vmem>>, vector<2x256xf32>
    tpu.vector_store %arg5[%c2, %c0_11], %38 {strides = array<i32>} : memref<18x256xf32, #tpu.memory_space<vmem>>, vector<2x256xf32>,
    %c8 = arith.constant 8 : index
    %c0_12 = arith.constant 0 : index
    %40 = vector.load %arg5[%c8, %c0_12] : memref<18x256xf32, #tpu.memory_space<vmem>>, vector<2x256xf32>
    tpu.vector_store %arg5[%c8, %c0_12], %14 {strides = array<i32>} : memref<18x256xf32, #tpu.memory_space<vmem>>, vector<2x256xf32>,
    %41 = vector.shape_cast %10 : vector<1x256xi1> to vector<1x256xi1>
    %42 = vector.broadcast %41 : vector<1x256xi1> to vector<2x256xi1>
    %43 = arith.select %42, %34, %35 : vector<2x256xi1>, vector<2x256xf32>
    %c14 = arith.constant 14 : index
    %c0_13 = arith.constant 0 : index
    %44 = vector.load %arg5[%c14, %c0_13] : memref<18x256xf32, #tpu.memory_space<vmem>>, vector<2x256xf32>
    tpu.vector_store %arg5[%c14, %c0_13], %43 {strides = array<i32>} : memref<18x256xf32, #tpu.memory_space<vmem>>, vector<2x256xf32>,
    %c16_i32_14 = arith.constant 16 : i32
    %45 = tpu.dynamic_rotate %22 by %c16_i32_14 dim 1 : vector<2x256xf32>, i32 -> vector<2x256xf32>
    %c240_i32_15 = arith.constant 240 : i32
    %46 = tpu.dynamic_rotate %22 by %c240_i32_15 dim 1 : vector<2x256xf32>, i32 -> vector<2x256xf32>
    %47 = vector.shape_cast %8 : vector<1x256xi1> to vector<1x256xi1>
    %48 = vector.broadcast %47 : vector<1x256xi1> to vector<2x256xi1>
    %49 = arith.select %48, %46, %45 : vector<2x256xi1>, vector<2x256xf32>
    %c4 = arith.constant 4 : index
    %c0_16 = arith.constant 0 : index
    %50 = vector.load %arg5[%c4, %c0_16] : memref<18x256xf32, #tpu.memory_space<vmem>>, vector<2x256xf32>
    tpu.vector_store %arg5[%c4, %c0_16], %49 {strides = array<i32>} : memref<18x256xf32, #tpu.memory_space<vmem>>, vector<2x256xf32>,
    %c10 = arith.constant 10 : index
    %c0_17 = arith.constant 0 : index
    %51 = vector.load %arg5[%c10, %c0_17] : memref<18x256xf32, #tpu.memory_space<vmem>>, vector<2x256xf32>
    tpu.vector_store %arg5[%c10, %c0_17], %22 {strides = array<i32>} : memref<18x256xf32, #tpu.memory_space<vmem>>, vector<2x256xf32>,
    %52 = vector.shape_cast %10 : vector<1x256xi1> to vector<1x256xi1>
    %53 = vector.broadcast %52 : vector<1x256xi1> to vector<2x256xi1>
    %54 = arith.select %53, %45, %46 : vector<2x256xi1>, vector<2x256xf32>
    %c16 = arith.constant 16 : index
    %c0_18 = arith.constant 0 : index
    %55 = vector.load %arg5[%c16, %c0_18] : memref<18x256xf32, #tpu.memory_space<vmem>>, vector<2x256xf32>
    tpu.vector_store %arg5[%c16, %c0_18], %54 {strides = array<i32>} : memref<18x256xf32, #tpu.memory_space<vmem>>, vector<2x256xf32>,
    %c0_19 = arith.constant 0 : index
    %c0_20 = arith.constant 0 : index
    %56 = vector.load %arg2[%c0_19, %c0_20] : memref<2x18xbf16, #tpu.memory_space<vmem>>, vector<2x18xbf16>
    %c0_21 = arith.constant 0 : index
    %c0_22 = arith.constant 0 : index
    %57 = vector.load %arg5[%c0_21, %c0_22] : memref<18x256xf32, #tpu.memory_space<vmem>>, vector<18x256xf32>
    %58 = arith.truncf %57 : vector<18x256xf32> to vector<18x256xbf16>
    %cst = arith.constant dense<0.000000e+00> : vector<2x256xf32>
    %59 = tpu.matmul %56, %58, %cst {dimension_numbers = #tpu.dot_dimension_numbers<[1], [0], [0], [1], [0, 0, 1, 1], [], []>} : vector<2x18xbf16>, vector<18x256xbf16>, vector<2x256xf32> -> vector<2x256xf32>
    %cst_23 = arith.constant dense<0.000000e+00> : vector<2xf32>
    %60 = vector.multi_reduction <add>, %59, %cst_23 [1] : vector<2x256xf32> to vector<2xf32>
    %61 = vector.shape_cast %60 : vector<2xf32> to vector<2x1xf32>
    %cst_24 = arith.constant 3.906250e-03 : f32
    %62 = vector.broadcast %cst_24 : f32 to vector<2x1xf32>
    %63 = arith.mulf %61, %62 : vector<2x1xf32>
    %64 = arith.mulf %59, %59 : vector<2x256xf32>
    %cst_25 = arith.constant dense<0.000000e+00> : vector<2xf32>
    %65 = vector.multi_reduction <add>, %64, %cst_25 [1] : vector<2x256xf32> to vector<2xf32>
    %66 = vector.shape_cast %65 : vector<2xf32> to vector<2x1xf32>
    %cst_26 = arith.constant 3.906250e-03 : f32
    %67 = vector.broadcast %cst_26 : f32 to vector<2x1xf32>
    %68 = arith.mulf %66, %67 : vector<2x1xf32>
    %69 = arith.mulf %63, %63 : vector<2x1xf32>
    %70 = arith.subf %68, %69 : vector<2x1xf32>
    %cst_27 = arith.constant 0.000000e+00 : f32
    %71 = vector.broadcast %cst_27 : f32 to vector<2x1xf32>
    %72 = arith.maximumf %70, %71 : vector<2x1xf32>
    %73 = vector.broadcast %63 : vector<2x1xf32> to vector<2x256xf32>
    %74 = arith.subf %59, %73 : vector<2x256xf32>
    %cst_28 = arith.constant 9.99999974E-6 : f32
    %75 = vector.broadcast %cst_28 : f32 to vector<2x1xf32>
    %76 = arith.addf %72, %75 : vector<2x1xf32>
    %77 = math.rsqrt %76 : vector<2x1xf32>
    %78 = vector.broadcast %77 : vector<2x1xf32> to vector<2x256xf32>
    %79 = arith.mulf %74, %78 : vector<2x256xf32>
    %cst_29 = arith.constant 0.000000e+00 : f32
    %80 = vector.broadcast %cst_29 : f32 to vector<2x256xf32>
    %81 = arith.maximumf %79, %80 : vector<2x256xf32>
    %82 = arith.addf %13, %81 : vector<2x256xf32>
    %c1_i32_30 = arith.constant 1 : i32
    %83 = tpu.dynamic_rotate %82 by %c1_i32_30 dim 1 : vector<2x256xf32>, i32 -> vector<2x256xf32>
    %c255_i32_31 = arith.constant 255 : i32
    %84 = tpu.dynamic_rotate %82 by %c255_i32_31 dim 1 : vector<2x256xf32>, i32 -> vector<2x256xf32>
    %85 = vector.shape_cast %4 : vector<1x256xi1> to vector<1x256xi1>
    %86 = vector.broadcast %85 : vector<1x256xi1> to vector<2x256xi1>
    %87 = arith.select %86, %84, %83 : vector<2x256xi1>, vector<2x256xf32>
    %88 = vector.shape_cast %6 : vector<1x256xi1> to vector<1x256xi1>
    %89 = vector.broadcast %88 : vector<1x256xi1> to vector<2x256xi1>
    %90 = arith.select %89, %83, %84 : vector<2x256xi1>, vector<2x256xf32>
    %c16_i32_32 = arith.constant 16 : i32
    %91 = tpu.dynamic_rotate %87 by %c16_i32_32 dim 1 : vector<2x256xf32>, i32 -> vector<2x256xf32>
    %c240_i32_33 = arith.constant 240 : i32
    %92 = tpu.dynamic_rotate %87 by %c240_i32_33 dim 1 : vector<2x256xf32>, i32 -> vector<2x256xf32>
    %93 = vector.shape_cast %8 : vector<1x256xi1> to vector<1x256xi1>
    %94 = vector.broadcast %93 : vector<1x256xi1> to vector<2x256xi1>
    %95 = arith.select %94, %92, %91 : vector<2x256xi1>, vector<2x256xf32>
    %c0_34 = arith.constant 0 : index
    %c0_35 = arith.constant 0 : index
    %96 = vector.load %arg5[%c0_34, %c0_35] : memref<18x256xf32, #tpu.memory_space<vmem>>, vector<2x256xf32>
    tpu.vector_store %arg5[%c0_34, %c0_35], %95 {strides = array<i32>} : memref<18x256xf32, #tpu.memory_space<vmem>>, vector<2x256xf32>,
    %c6_36 = arith.constant 6 : index
    %c0_37 = arith.constant 0 : index
    %97 = vector.load %arg5[%c6_36, %c0_37] : memref<18x256xf32, #tpu.memory_space<vmem>>, vector<2x256xf32>
    tpu.vector_store %arg5[%c6_36, %c0_37], %87 {strides = array<i32>} : memref<18x256xf32, #tpu.memory_space<vmem>>, vector<2x256xf32>,
    %98 = vector.shape_cast %10 : vector<1x256xi1> to vector<1x256xi1>
    %99 = vector.broadcast %98 : vector<1x256xi1> to vector<2x256xi1>
    %100 = arith.select %99, %91, %92 : vector<2x256xi1>, vector<2x256xf32>
    %c12_38 = arith.constant 12 : index
    %c0_39 = arith.constant 0 : index
    %101 = vector.load %arg5[%c12_38, %c0_39] : memref<18x256xf32, #tpu.memory_space<vmem>>, vector<2x256xf32>
    tpu.vector_store %arg5[%c12_38, %c0_39], %100 {strides = array<i32>} : memref<18x256xf32, #tpu.memory_space<vmem>>, vector<2x256xf32>,
    %c16_i32_40 = arith.constant 16 : i32
    %102 = tpu.dynamic_rotate %82 by %c16_i32_40 dim 1 : vector<2x256xf32>, i32 -> vector<2x256xf32>
    %c240_i32_41 = arith.constant 240 : i32
    %103 = tpu.dynamic_rotate %82 by %c240_i32_41 dim 1 : vector<2x256xf32>, i32 -> vector<2x256xf32>
    %104 = vector.shape_cast %8 : vector<1x256xi1> to vector<1x256xi1>
    %105 = vector.broadcast %104 : vector<1x256xi1> to vector<2x256xi1>
    %106 = arith.select %105, %103, %102 : vector<2x256xi1>, vector<2x256xf32>
    %c2_42 = arith.constant 2 : index
    %c0_43 = arith.constant 0 : index
    %107 = vector.load %arg5[%c2_42, %c0_43] : memref<18x256xf32, #tpu.memory_space<vmem>>, vector<2x256xf32>
    tpu.vector_store %arg5[%c2_42, %c0_43], %106 {strides = array<i32>} : memref<18x256xf32, #tpu.memory_space<vmem>>, vector<2x256xf32>,
    %c8_44 = arith.constant 8 : index
    %c0_45 = arith.constant 0 : index
    %108 = vector.load %arg5[%c8_44, %c0_45] : memref<18x256xf32, #tpu.memory_space<vmem>>, vector<2x256xf32>
    tpu.vector_store %arg5[%c8_44, %c0_45], %82 {strides = array<i32>} : memref<18x256xf32, #tpu.memory_space<vmem>>, vector<2x256xf32>,
    %109 = vector.shape_cast %10 : vector<1x256xi1> to vector<1x256xi1>
    %110 = vector.broadcast %109 : vector<1x256xi1> to vector<2x256xi1>
    %111 = arith.select %110, %102, %103 : vector<2x256xi1>, vector<2x256xf32>
    %c14_46 = arith.constant 14 : index
    %c0_47 = arith.constant 0 : index
    %112 = vector.load %arg5[%c14_46, %c0_47] : memref<18x256xf32, #tpu.memory_space<vmem>>, vector<2x256xf32>
    tpu.vector_store %arg5[%c14_46, %c0_47], %111 {strides = array<i32>} : memref<18x256xf32, #tpu.memory_space<vmem>>, vector<2x256xf32>,
    %c16_i32_48 = arith.constant 16 : i32
    %113 = tpu.dynamic_rotate %90 by %c16_i32_48 dim 1 : vector<2x256xf32>, i32 -> vector<2x256xf32>
    %c240_i32_49 = arith.constant 240 : i32
    %114 = tpu.dynamic_rotate %90 by %c240_i32_49 dim 1 : vector<2x256xf32>, i32 -> vector<2x256xf32>
    %115 = vector.shape_cast %8 : vector<1x256xi1> to vector<1x256xi1>
    %116 = vector.broadcast %115 : vector<1x256xi1> to vector<2x256xi1>
    %117 = arith.select %116, %114, %113 : vector<2x256xi1>, vector<2x256xf32>
    %c4_50 = arith.constant 4 : index
    %c0_51 = arith.constant 0 : index
    %118 = vector.load %arg5[%c4_50, %c0_51] : memref<18x256xf32, #tpu.memory_space<vmem>>, vector<2x256xf32>
    tpu.vector_store %arg5[%c4_50, %c0_51], %117 {strides = array<i32>} : memref<18x256xf32, #tpu.memory_space<vmem>>, vector<2x256xf32>,
    %c10_52 = arith.constant 10 : index
    %c0_53 = arith.constant 0 : index
    %119 = vector.load %arg5[%c10_52, %c0_53] : memref<18x256xf32, #tpu.memory_space<vmem>>, vector<2x256xf32>
    tpu.vector_store %arg5[%c10_52, %c0_53], %90 {strides = array<i32>} : memref<18x256xf32, #tpu.memory_space<vmem>>, vector<2x256xf32>,
    %120 = vector.shape_cast %10 : vector<1x256xi1> to vector<1x256xi1>
    %121 = vector.broadcast %120 : vector<1x256xi1> to vector<2x256xi1>
    %122 = arith.select %121, %113, %114 : vector<2x256xi1>, vector<2x256xf32>
    %c16_54 = arith.constant 16 : index
    %c0_55 = arith.constant 0 : index
    %123 = vector.load %arg5[%c16_54, %c0_55] : memref<18x256xf32, #tpu.memory_space<vmem>>, vector<2x256xf32>
    tpu.vector_store %arg5[%c16_54, %c0_55], %122 {strides = array<i32>} : memref<18x256xf32, #tpu.memory_space<vmem>>, vector<2x256xf32>,
    %c0_56 = arith.constant 0 : index
    %c0_57 = arith.constant 0 : index
    %124 = vector.load %arg3[%c0_56, %c0_57] : memref<2x18xbf16, #tpu.memory_space<vmem>>, vector<2x18xbf16>
    %c0_58 = arith.constant 0 : index
    %c0_59 = arith.constant 0 : index
    %125 = vector.load %arg5[%c0_58, %c0_59] : memref<18x256xf32, #tpu.memory_space<vmem>>, vector<18x256xf32>
    %126 = arith.truncf %125 : vector<18x256xf32> to vector<18x256xbf16>
    %cst_60 = arith.constant dense<0.000000e+00> : vector<2x256xf32>
    %127 = tpu.matmul %124, %126, %cst_60 {dimension_numbers = #tpu.dot_dimension_numbers<[1], [0], [0], [1], [0, 0, 1, 1], [], []>} : vector<2x18xbf16>, vector<18x256xbf16>, vector<2x256xf32> -> vector<2x256xf32>
    %cst_61 = arith.constant dense<0.000000e+00> : vector<2xf32>
    %128 = vector.multi_reduction <add>, %127, %cst_61 [1] : vector<2x256xf32> to vector<2xf32>
    %129 = vector.shape_cast %128 : vector<2xf32> to vector<2x1xf32>
    %cst_62 = arith.constant 3.906250e-03 : f32
    %130 = vector.broadcast %cst_62 : f32 to vector<2x1xf32>
    %131 = arith.mulf %129, %130 : vector<2x1xf32>
    %132 = arith.mulf %127, %127 : vector<2x256xf32>
    %cst_63 = arith.constant dense<0.000000e+00> : vector<2xf32>
    %133 = vector.multi_reduction <add>, %132, %cst_63 [1] : vector<2x256xf32> to vector<2xf32>
    %134 = vector.shape_cast %133 : vector<2xf32> to vector<2x1xf32>
    %cst_64 = arith.constant 3.906250e-03 : f32
    %135 = vector.broadcast %cst_64 : f32 to vector<2x1xf32>
    %136 = arith.mulf %134, %135 : vector<2x1xf32>
    %137 = arith.mulf %131, %131 : vector<2x1xf32>
    %138 = arith.subf %136, %137 : vector<2x1xf32>
    %cst_65 = arith.constant 0.000000e+00 : f32
    %139 = vector.broadcast %cst_65 : f32 to vector<2x1xf32>
    %140 = arith.maximumf %138, %139 : vector<2x1xf32>
    %141 = vector.broadcast %131 : vector<2x1xf32> to vector<2x256xf32>
    %142 = arith.subf %127, %141 : vector<2x256xf32>
    %cst_66 = arith.constant 9.99999974E-6 : f32
    %143 = vector.broadcast %cst_66 : f32 to vector<2x1xf32>
    %144 = arith.addf %140, %143 : vector<2x1xf32>
    %145 = math.rsqrt %144 : vector<2x1xf32>
    %146 = vector.broadcast %145 : vector<2x1xf32> to vector<2x256xf32>
    %147 = arith.mulf %142, %146 : vector<2x256xf32>
    %cst_67 = arith.constant 0.000000e+00 : f32
    %148 = vector.broadcast %cst_67 : f32 to vector<2x256xf32>
    %149 = arith.maximumf %147, %148 : vector<2x256xf32>
    %150 = arith.addf %14, %149 : vector<2x256xf32>
    %c0_68 = arith.constant 0 : index
    %c0_69 = arith.constant 0 : index
    %c0_70 = arith.constant 0 : index
    %c0_71 = arith.constant 0 : index
    %151 = vector.load %arg4[%c0_68, %c0_69, %c0_70, %c0_71] : memref<1x2x2x256xf32, #tpu.memory_space<vmem>>, vector<1x1x2x256xf32>
    %152 = vector.shape_cast %151 : vector<1x1x2x256xf32> to vector<2x256xf32>
    %153 = vector.shape_cast %82 : vector<2x256xf32> to vector<1x1x2x256xf32>
    tpu.vector_store %arg4[%c0_68, %c0_69, %c0_70, %c0_71], %153 {strides = array<i32>} : memref<1x2x2x256xf32, #tpu.memory_space<vmem>>, vector<1x1x2x256xf32>,
    %c0_72 = arith.constant 0 : index
    %c1 = arith.constant 1 : index
    %c0_73 = arith.constant 0 : index
    %c0_74 = arith.constant 0 : index
    %154 = vector.load %arg4[%c0_72, %c1, %c0_73, %c0_74] : memref<1x2x2x256xf32, #tpu.memory_space<vmem>>, vector<1x1x2x256xf32>
    %155 = vector.shape_cast %154 : vector<1x1x2x256xf32> to vector<2x256xf32>
    %156 = vector.shape_cast %150 : vector<2x256xf32> to vector<1x1x2x256xf32>
    tpu.vector_store %arg4[%c0_72, %c1, %c0_73, %c0_74], %156 {strides = array<i32>} : memref<1x2x2x256xf32, #tpu.memory_space<vmem>>, vector<1x1x2x256xf32>,
    return
  }
  func.func @transform_0(%arg0: i32) -> (i32, i32, i32) {
    %c0_i32 = arith.constant 0 : i32
    %c0_i32_0 = arith.constant 0 : i32
    %c0_i32_1 = arith.constant 0 : i32
    return %arg0, %c0_i32, %c0_i32_0 : i32, i32, i32
  }
  func.func @transform_1(%arg0: i32) -> (i32, i32) {
    %c0_i32 = arith.constant 0 : i32
    %c0_i32_0 = arith.constant 0 : i32
    %c0_i32_1 = arith.constant 0 : i32
    return %c0_i32, %c0_i32_0 : i32, i32
  }
  func.func @transform_2(%arg0: i32) -> (i32, i32) {
    %c0_i32 = arith.constant 0 : i32
    %c0_i32_0 = arith.constant 0 : i32
    %c0_i32_1 = arith.constant 0 : i32
    return %c0_i32, %c0_i32_0 : i32, i32
  }
  func.func @transform_3(%arg0: i32) -> (i32, i32, i32, i32) {
    %c0_i32 = arith.constant 0 : i32
    %c0_i32_0 = arith.constant 0 : i32
    %c0_i32_1 = arith.constant 0 : i32
    %c0_i32_2 = arith.constant 0 : i32
    return %arg0, %c0_i32, %c0_i32_0, %c0_i32_1 : i32, i32, i32, i32
  }
}

</mosaic_0001>

<bundles_post_ra>
// kernel: tpu_custom_call.1
= control target key start
LH: loop header
LB: loop body
LE: loop exit
PB: predicated region body
PF: predicated region fallthrough
CT: control target
= control target key end

     0   :  { %8 = vsyncpa [#allocation4], 0  ;;  %s1330_s0 = inlined_call_operand.hbm [shape: f32[2,4,256], index: 0, kind: input, shape index: {}]   ;;  %s1331_s1 = inlined_call_operand.vmem [shape: bf16[2,18], index: 1, kind: input, shape index: {}]   ;;  %s1332_s2 = inlined_call_operand.vmem [shape: bf16[2,18], index: 2, kind: input, shape index: {}]   ;;  %s1333_s3 = inlined_call_operand.hbm [shape: f32[2,2,2,256], index: 3, kind: output, shape index: {}]  }
   0x1   :  { %10 = vsyncpa [#allocation4 + $0x1], 0 }
   0x2   :  { %11 = vsyncpa [#allocation5], 0 }
   0x3   :  { %13 = vsyncpa [#allocation5 + $0x1], 0  ;;  %s965_s12 = smov 0   ;;  %s967_s13 = smov 0  }
   0x4   :  { %s969_s14 = smov 0   ;;  %s971_s15 = smov 0  }
   0x5 LB: > { %s986_s16 = sadd.s32 4294967295, %s933_s15   ;;  %s760_s17 = sadd.s32 4294967294, %s933_s15   ;;  %s933_s15 = sphi %s971_s15, %s1358_s15   ;;  %s929_s14 = sphi %s969_s14, %s1357_s14   ;;  %s925_s13 = sphi %s967_s13, %s1356_s13   ;;  %s921_s12 = sphi %s965_s12, %s1355_s12  }
   0x6   : > { %s990_s18 = sadd.s32 1, %s933_s15   ;;  %s26_s19 = sadd.s32 1, %s929_s14 }
   0x7   : > { %s23_s20 = ssub.s32 %s933_s15, %s990_s18  ;;  %p33_p0 = scmp.ne.s32.totalorder %s929_s14, %s925_s13 }
   0x8   : > { %p24_p1 = scmp.eq.s32.totalorder %s23_s20, 0  ;;  %p34_p2 = scmp.eq.s32.totalorder %s933_s15, 0 }
   0x9   : > { %p39_p3 = scmp.ne.s32.totalorder %s925_s13, %s921_s12  ;;  %p40_p4 = scmp.eq.s32.totalorder %s986_s16, 0 }
   0xa   : > { %s1002_s21 = scalar_select %p24_p1, %s929_s14, %s26_s19  }
   0xb   : > { %p1004_p5 = por %p34_p2, %p33_p0  ;;  %p1008_p6 = por %p40_p4, %p39_p3 }
   0xc   : > { %p105_p7 = scmp.eq.s32.totalorder %s986_s16, 1  ;;  %p111_p8 = scmp.eq.s32.totalorder %s760_s17, 1 }
   0xd   : > { %s1337_s23 = scalar_select %p1008_p6, 1, 0 }
   0xe   : > { %p794_p10 = scmp.lt.s32.totalorder %s933_s15, 2  ;;  %p1015_p11 = por %p105_p7, %p33_p0 }
   0xf   : > { %p1019_p12 = por %p111_p8, %p39_p3  ;;  %s137_s26 = sand.u32 1, %s929_s14  }
  0x10   : > { %s1338_s24 = scalar_select %p1015_p11, 1, 0 }
  0x11   : > { %s1339_s25 = scalar_select %p1019_p12, 1, 0 }
  0x12   : > { %s780_s27 = sshll.u32 %s933_s15, 7  ;;  %s763_s28 = sshll.u32 %s137_s26, 3 }
  0x13   : > { %s1028_s4 = scalar_lea.hbm %s1330_s0, %s780_s27  ;;  %s141_s5 = scalar_lea.vmem [#allocation3], %s763_s28 }
  0x14   : > { %s149_s6 = sshll.u32 %s141_s5, 4  ;;  %p1032_p13 = pnand %p794_p10, %p1004_p5  ;;  %s1036_s6 = int_to_ptr.vmem [resolvable:$true] %s149_s6 }
  0x15   : > { %s138_s8 = scalar_lea.sflag [#allocation4], %s137_s26  ;;  %s841_s9 = scalar_lea.hbm %s1028_s4, 128 }
  0x16   : > { %p842_p2 = scmp.ne.s32.totalorder %s1028_s4, %s841_s9  ;;  %p843_p3 = pneg %p1032_p13 }
  0x17   : > { %s846_s17 = scalar_lea.hbm %s1330_s0, 256  ;;  %p847_p5 = scmp.lt.s32.totalorder %s1028_s4, %s1330_s0 }
  0x18   : > { %p844_p4 = pnand %p843_p3, %p842_p2  ;;  %p848_p8 = scmp.lt.s32.totalorder %s846_s17, %s841_s9 }
  0x1a   : > { %p845_p7 = pneg %p844_p4  ;;  %p849_p10 = por %p848_p8, %p847_p5 }
  0x1c   : > { %p850_p9 = pnand %p849_p10, %p845_p7 }
  0x1e   : > { %853 = shalt.err (!%p850_p9)
}
  0x1f   : > { %s854_s22 = scalar_lea.vmem %s1036_s6, 128  ;;  %s935_s26 = smov [#allocation3]  }
  0x20   : > { %p855_p0 = scmp.ne.s32.totalorder %s1036_s6, %s854_s22  ;;  %s859_s27 = sshll.u32 %s935_s26, 4  ;;  %s860_s27 = int_to_ptr.vmem [resolvable:$false] %s859_s27 }
  0x21   : > { %s861_s28 = scalar_lea.vmem %s860_s27, 256  ;;  %p862_p4 = scmp.lt.s32.totalorder %s1036_s6, %s860_s27 }
  0x22   : > { %p857_p1 = pnand %p855_p0, %p843_p3  ;;  %p863_p12 = scmp.lt.s32.totalorder %s861_s28, %s854_s22 }
  0x24   : > { %p858_p2 = pneg %p857_p1  ;;  %p864_p11 = por %p863_p12, %p862_p4 }
  0x26   : > { %p865_p6 = pnand %p864_p11, %p858_p2 }
  0x28   : > { %868 = shalt.err (!%p865_p6)
}
  0x29   : > { %789 = dma.hbm_to_vmem [thread:$0]  (!%p1032_p13), %s1028_s4, 128, %s1036_s6, %s138_s8  }
  0x2a   : > { %p1341_p9 = scmp.lt.s32.totalorder %s933_s15, 3  ;;  %p1342_p7 = scmp.ge.s32.totalorder %s933_s15, 1 }
  0x2c   : > { %p155_p0 = pnand %p1342_p7, %p1341_p9 }
  0x2d   : > { %s1063_s29 = sand.u32 (!%p155_p0), 1, %s925_s13   ;;  %p1343_p6 = scmp.ne.s32.totalorder (!%p155_p0), %s1337_s23, 0 }
  0x2e   : > { %158 = sbr.rel (%p155_p0) target bundleno = 1353 (0x549), region = 32  ;;  %s767_s30 = sshll.u32 (!%p155_p0), %s1063_s29, 3 }
  0x2f   : > { %s161_s5 = scalar_lea.sflag (!%p155_p0), [#allocation4], %s1063_s29  ;;  %s164_s7 = scalar_lea.vmem (!%p155_p0), [#allocation3], %s767_s30 }
  0x33   : > { %912 = dma.done.wait (%p1343_p6), %s161_s5, 128  }
  0x34   : > { %914 = vsyncadd (%p1343_p6), %s161_s5, 4294967168  ;;  %v1073_v0 = vld [vmem:[%s164_s7] sm:$0xff]  ;;  %s936_s4 = smov 127   ;;  %s937_s6 = smov 1   ;;  %v188_v4 = vlaneseq  ;;  %v940_v33 = vmov 0   ;;  %vm360_vm9 = vcmask 1040384  }
  0x35   : > { %v204_v1 = vrot.slane %v1073_v0, 2  ;;  %v203_v2 = vcombine.high %v1073_v0, %v1073_v0  ;;  %s938_s23 = smov 16   ;;  %s939_s8 = smov 112   ;;  %399 = vmatprep.mubr.bf16.mxu0 %v940_v33  ;;  %612 = vmatprep.mubr.bf16.mxu1 %v940_v33  ;;  %vm356_vm10 = vcmask 146432   ;;  %vm408_vm11 = vcmask 1041408  }
  0x36   : > { %v1085_v5 = vand.u32 127, %v188_v4  ;;  %s1197_s11 = scalar_lea.vmem [#allocation6], %s767_s30  ;;  %s781_s20 = sshll.u32 %s986_s16, 7 }
  0x37   : > { %215 = vrot.lane.b32.xlu1 %v204_v1, %s936_s4  ;;  %299 = vst [vmem:[#allocation2 + $0x8] sm:$0x3] %v204_v1  ;;  %208 = vrot.lane.b32.xlu0 %v204_v1, %s937_s6  ;;  %v205_v3 = vrot.slane %v203_v2, 2  ;;  %s687_s22 = sshll.u32 %s1197_s11, 4  ;;  %s1284_s28 = scalar_lea.hbm %s1333_s3, %s781_s20  ;;  %s1286_s22 = int_to_ptr.vmem [resolvable:$true] %s687_s22 }
  0x38   : > { %v1088_v6 = vadd.s32 128, %v1085_v5  ;;  %v191_v7 = vand.u32 15, %v1085_v5  ;;  %vm219_vm0 = vcmp.lt.s32.totalorder %v1085_v5, 127  ;;  %vm212_vm1 = vcmp.lt.s32.totalorder %v1085_v5, 1  ;;  %s674_s30 = scalar_lea.sflag [#allocation5], %s1063_s29  ;;  %s869_s5 = scalar_lea.vmem %s1286_s22, 128 }
  0x39   : > { %300 = vst [vmem:[#allocation2] sm:$0x3] %v205_v3  ;;  %vm197_vm6 = vcmp.lt.s32.totalorder %v1085_v5, 16  ;;  %vm244_vm7 = vcmp.lt.s32.totalorder %v1085_v5, 112  ;;  %v560_v5 = vld [vmem:[%s1332_s2] sm:$0x1]  ;;  %p870_p11 = scmp.ne.s32.totalorder %s1286_s22, %s869_s5 }
  0x3a   : > { %v192_v8 = vand.u32 15, %v1088_v6  ;;  %vm1094_vm2 = vcmp.eq.s32.totalorder %v191_v7, 15  ;;  %vm1102_vm4 = vcmp.eq.s32.totalorder %v191_v7, 0  ;;  %vm200_vm8 = vcmp.ge.s32.totalorder %v1088_v6, 240  ;;  %p1352_p12 = scmp.ne.s32.totalorder %s1338_s24, 0  ;;  %s942_s16 = smov [#allocation6]  }
  0x3b   : > { %217 = vrot.lane.b32.xlu1 %v205_v3, %s936_s4  ;;  %210 = vrot.lane.b32.xlu0 %v205_v3, %s937_s6  ;;  %s873_s7 = sshll.u32 %s942_s16, 4  ;;  %s874_s7 = int_to_ptr.vmem [resolvable:$false] %s873_s7 }
  0x3c   : > { %vm1098_vm3 = vcmp.eq.s32.totalorder %v192_v8, 15  ;;  %vm1106_vm5 = vcmp.eq.s32.totalorder %v192_v8, 0  ;;  %p871_p13 = pnand %p870_p11, %p1352_p12  ;;  %p876_p3 = scmp.lt.s32.totalorder %s1286_s22, %s874_s7 }
  0x3e   : > { %p872_p1 = pneg %p871_p13 }
  0x3f   : > { %279 = vrot.lane.b32.xlu1 %v205_v3, %s938_s23  ;;  %277 = vrot.lane.b32.xlu0 %v204_v1, %s938_s23 }
  0xa9   : > { %v216_v9 = vpop.permute.xlu1 %215  ;;  %v209_v10 = vpop.permute.xlu0 %208 }
  0xad   : > { %v218_v15 = vpop.permute.xlu1 %217  ;;  %v211_v16 = vpop.permute.xlu0 %210 }
  0xae   : > { %v220_v17 = vsel %vm219_vm0, %v216_v9, %v218_v15  ;;  %v221_v18 = vsel %vm219_vm0, %v218_v15, %v216_v9  ;;  %v213_v19 = vsel %vm212_vm1, %v209_v10, %v211_v16  ;;  %v214_v20 = vsel %vm212_vm1, %v211_v16, %v209_v10 }
  0xaf   : > { %v232_v21 = vsel %vm1094_vm2, %v214_v20, %v220_v17  ;;  %v233_v22 = vsel %vm1098_vm3, %v213_v19, %v221_v18  ;;  %v226_v23 = vsel %vm1102_vm4, %v220_v17, %v214_v20  ;;  %v227_v24 = vsel %vm1106_vm5, %v221_v18, %v213_v19 }
  0xb0   : > { %311 = vrot.lane.b32.xlu0 %v232_v21, %s938_s23  ;;  %v335_v25 = vrot.slane %v232_v21, 6  ;;  %313 = vrot.lane.b32.xlu1 %v233_v22, %s938_s23  ;;  %v336_v26 = vrot.slane %v233_v22, 6  ;;  %v257_v27 = vrot.slane %v226_v23, 2  ;;  %v258_v28 = vrot.slane %v227_v24, 2 }
  0xb1   : > { %v1129_v29 = vpop.permute.xlu1 %279  ;;  %v278_v30 = vpop.permute.xlu0 %277 }
  0xb2   : > { %339 = vst [vmem:[#allocation2 + $0x8] sm:$0xc] %v335_v25  ;;  %340 = vst [vmem:[#allocation2] sm:$0xc] %v336_v26  ;;  %v1134_v31 = vsel %vm197_vm6, %v278_v30, %v1129_v29  ;;  %v282_v2 = vsel %vm197_vm6, %v1129_v29, %v278_v30 }
  0xb3   : > { %261 = vst [vmem:[#allocation2 + $0x28] sm:$0xc0] %v257_v27  ;;  %262 = vst [vmem:[#allocation2 + $0x10] sm:$0xc0] %v258_v28  ;;  %v294_v32 = vrot.slane %v1134_v31, 6 }
  0xb4   : > { %317 = vrot.lane.b32.xlu0 %v232_v21, %s939_s8  ;;  %319 = vrot.lane.b32.xlu1 %v233_v22, %s939_s8 }
  0xb5   : > { %298 = vst [vmem:[#allocation2 + $0x10] sm:$0xc] %v294_v32 }
  0xb8   : > { %234 = vrot.lane.b32.xlu0 %v226_v23, %s938_s23  ;;  %236 = vrot.lane.b32.xlu1 %v227_v24, %s938_s23 }
  0xbc   : > { %240 = vrot.lane.b32.xlu0 %v226_v23, %s939_s8  ;;  %242 = vrot.lane.b32.xlu1 %v227_v24, %s939_s8  ;;  %v345_v23 = vld [vmem:[%s1331_s1] sm:$0x1] }
  0xc0   : > { %283 = vrot.lane.b32.xlu0 %v204_v1, %s939_s8  ;;  %285 = vrot.lane.b32.xlu1 %v205_v3, %s939_s8 }
 0x122   : > { %v314_v34 = vpop.permute.xlu1 %313  ;;  %v312_v35 = vpop.permute.xlu0 %311 }
 0x123   : > { %v315_v36 = vsel %vm197_vm6, %v312_v35, %v314_v34  ;;  %v316_v40 = vsel %vm197_vm6, %v314_v34, %v312_v35 }
 0x124   : > { %v328_v37 = vrot.slane %v315_v36, 4 }
 0x126   : > { %332 = vst [vmem:[#allocation2 + $0x10] sm:$0x30] %v328_v37  ;;  %v320_v38 = vpop.permute.xlu1 %319  ;;  %v318_v39 = vpop.permute.xlu0 %317 }
 0x127   : > { %v321_v41 = vsel %vm244_vm7, %v318_v39, %v320_v38  ;;  %v322_v42 = vsel %vm244_vm7, %v320_v38, %v318_v39 }
 0x128   : > { %v323_v43 = vsel %vm197_vm6, %v321_v41, %v316_v40  ;;  %v342_v44 = vsel %vm200_vm8, %v315_v36, %v322_v42  ;;  %343 = vst [vmem:[#allocation2 + $0x18] sm:$0x3] %v321_v41 }
 0x129   : > { %v327_v45 = vrot.slane %v323_v43, 4  ;;  %344 = vst [vmem:[#allocation2 + $0x20] sm:$0x3] %v342_v44 }
 0x12a   : > { %v237_v46 = vpop.permute.xlu1 %236  ;;  %v235_v47 = vpop.permute.xlu0 %234 }
 0x12b   : > { %331 = vst [vmem:[#allocation2 + $0x28] sm:$0x30] %v327_v45  ;;  %v238_v48 = vsel %vm197_vm6, %v235_v47, %v237_v46  ;;  %v239_v51 = vsel %vm197_vm6, %v237_v46, %v235_v47 }
 0x12c   : > { %254 = vst [vmem:[#allocation2 + $0x10] sm:$0x3] %v238_v48 }
 0x12e   : > { %v243_v49 = vpop.permute.xlu1 %242  ;;  %v241_v50 = vpop.permute.xlu0 %240 }
 0x12f   : > { %v245_v52 = vsel %vm244_vm7, %v241_v50, %v243_v49  ;;  %v246_v53 = vsel %vm244_vm7, %v243_v49, %v241_v50  ;;  %v350_v54 = vld [vmem:[#allocation2 + $0x18] sm:$0x3] }
 0x130   : > { %v251_v55 = vsel %vm197_vm6, %v245_v52, %v239_v51  ;;  %v268_v56 = vsel %vm200_vm8, %v238_v48, %v246_v53  ;;  %v271_v57 = vrot.slane %v245_v52, 4  ;;  %v351_v58 = vld [vmem:[#allocation2 + $0x20] sm:$0x3]  ;;  %v354_v59 = vpack.c.bf16 %v350_v54, %v350_v54 }
 0x131   : > { %253 = vst [vmem:[#allocation2 + $0x28] sm:$0x3] %v251_v55  ;;  %v272_v60 = vrot.slane %v268_v56, 4  ;;  %v355_v61 = vpack.c.bf16 %v351_v58, %v351_v58 }
 0x132   : > { %275 = vst [vmem:[#allocation2 + $0x8] sm:$0x30] %v271_v57  ;;  %v286_v62 = vpop.permute.xlu1 %285  ;;  %v284_v63 = vpop.permute.xlu0 %283  ;;  %v362_v1 = vsel %vm360_vm9, %v354_v59, 0 }
 0x133   : > { %276 = vst [vmem:[#allocation2] sm:$0x30] %v272_v60  ;;  %v287_v3 = vsel %vm244_vm7, %v284_v63, %v286_v62  ;;  %v288_v7 = vsel %vm244_vm7, %v286_v62, %v284_v63  ;;  %769 = vmatprep.subr.msk.bf16.mxu0 %vm360_vm9, %v355_v61  ;;  %v347_v18 = vld [vmem:[#allocation2 + $0x10] sm:$0xff] }
 0x134   : > { %v289_v8 = vsel %vm197_vm6, %v287_v3, %v282_v2  ;;  %v302_v9 = vsel %vm200_vm8, %v1134_v31, %v288_v7  ;;  %v305_v10 = vrot.slane %v287_v3, 2  ;;  %380 = vmatpush1.bf16.msra.mxu0 %v362_v1 }
 0x135   : > { %v293_v15 = vrot.slane %v289_v8, 6  ;;  %v306_v16 = vrot.slane %v302_v9, 2 }
 0x136   : > { %309 = vst [vmem:[#allocation2 + $0x8] sm:$0xc0] %v305_v10 }
 0x137   : > { %297 = vst [vmem:[#allocation2 + $0x28] sm:$0xc] %v293_v15  ;;  %310 = vst [vmem:[#allocation2] sm:$0xc0] %v306_v16 }
 0x13d   : > { %v348_v17 = vld [vmem:[#allocation2 + $0x8] sm:$0xff] }
 0x13e   : > { %v349_v19 = vld [vmem:[#allocation2] sm:$0xff]  ;;  %v346_v20 = vld [vmem:[#allocation2 + $0x28] sm:$0xff] }
 0x13f   : > { %v353_v21 = vpack.c.bf16 %v349_v19, %v347_v18  ;;  %v352_v22 = vpack.c.bf16 %v348_v17, %v346_v20 }
 0x141   : > { %381 = vmatprep.subr.bf16.mxu0 %v353_v21 }
 0x142   : > { %382 = vmatpush1.bf16.msra.mxu0 %v352_v22 }
 0x145   : > { %770 = vmatmul.mubr.msk.bf16.vlgmr.msra.gmra.mxu0 %vm356_vm10, %v345_v23 }
 0x205   : > { %v401_v24 = vpop.f32.mrf.mxu0 }
 0x206   : > { %v415_v25 = vmul.f32 %v401_v24, %v401_v24  ;;  %v409_v28 = vsel %vm408_vm11, %v401_v24, 0.0 }
 0x207   : > { %v403_v26 = vpop.f32.mrf.mxu0 }
 0x208   : > { %v416_v27 = vmul.f32 %v403_v26, %v403_v26  ;;  %v410_v29 = vsel %vm408_vm11, %v403_v26, 0.0  ;;  %v417_v32 = vsel %vm408_vm11, %v415_v25, 0.0 }
 0x209   : > { %v405_v30 = vpop.f32.mrf.mxu0  ;;  %v411_v31 = vadd.f32 %v410_v29, %v409_v28 }
 0x20a   : > { %v418_v33 = vsel %vm408_vm11, %v416_v27, 0.0 }
 0x20b   : > { %412 = vadd.xlane.f32.xlu0 %v411_v31  ;;  %v406_v34 = vpop.f32.mrf.mxu0  ;;  %v419_v35 = vadd.f32 %v418_v33, %v417_v32 }
 0x20d   : > { %420 = vadd.xlane.f32.xlu1 %v419_v35 }
 0x294   : > { %v413_v36 = vpop.xlane.xlu0 %412 }
 0x295   : > { %v414_v37 = vmul.f32 0.00390625, %v413_v36 }
 0x296   : > { %v421_v38 = vpop.xlane.xlu1 %420 }
 0x297   : > { %v422_v39 = vmul.f32 0.00390625, %v421_v38  ;;  %v423_v40 = vmul.f32 %v414_v37, %v414_v37  ;;  %v426_v44 = vsub.f32 %v401_v24, %v414_v37  ;;  %v427_v45 = vsub.f32 %v403_v26, %v414_v37 }
 0x299   : > { %v424_v41 = vsub.f32 %v422_v39, %v423_v40 }
 0x29b   : > { %v425_v42 = vmax.f32 %v424_v41, 0.0 }
 0x29d   : > { %v428_v43 = vadd.f32 1e-05, %v425_v42 }
 0x29f   : > { %837 = vrsqrt.f32 %v428_v43 }
 0x2ac   : > { %v838_v46 = vpop.eup %837 }
 0x2ad   : > { %v430_v47 = vmul.f32 %v838_v46, %v426_v44  ;;  %v431_v48 = vmul.f32 %v838_v46, %v427_v45 }
 0x2af   : > { %v432_v49 = vmax.f32 %v430_v47, 0.0  ;;  %v433_v50 = vmax.f32 %v431_v48, 0.0 }
 0x2b1   : > { %v436_v51 = vcombine.low %v432_v49, %v433_v50 }
 0x2b3   : > { %v438_v52 = vadd.f32 %v436_v51, %v1073_v0 }
 0x2b5   : > { %514 = vst [vmem:[#allocation2 + $0x8] sm:$0x3] %v438_v52  ;;  %442 = vrot.lane.b32.xlu0 %v438_v52, %s937_s6  ;;  %v440_v53 = vcombine.high %v438_v52, %v438_v52  ;;  %773 = vst.sshfl [vmem:[%s1197_s11] sm:$0x33 pattern:$0x76325410] %v438_v52 }
 0x2b7   : > { %444 = vrot.lane.b32.xlu1 %v440_v53, %s937_s6  ;;  %515 = vst [vmem:[#allocation2] sm:$0x3] %v440_v53 }
 0x2b9   : > { %448 = vrot.lane.b32.xlu0 %v438_v52, %s936_s4 }
 0x2bb   : > { %450 = vrot.lane.b32.xlu1 %v440_v53, %s936_s4  ;;  %s875_s4 = scalar_lea.vmem %s874_s7, 256 }
 0x2bc   : > { %p877_p5 = scmp.lt.s32.totalorder %s875_s4, %s869_s5 }
 0x2bd   : > { %492 = vrot.lane.b32.xlu0 %v438_v52, %s938_s23 }
 0x2be   : > { %p878_p8 = por %p877_p5, %p876_p3 }
 0x2bf   : > { %494 = vrot.lane.b32.xlu1 %v440_v53, %s938_s23 }
 0x2c0   : > { %p879_p10 = pnand %p878_p8, %p872_p1 }
 0x327   : > { %v443_v54 = vpop.permute.xlu0 %442 }
 0x329   : > { %v445_v55 = vpop.permute.xlu1 %444 }
 0x32a   : > { %v446_v58 = vsel %vm212_vm1, %v443_v54, %v445_v55  ;;  %v447_v59 = vsel %vm212_vm1, %v445_v55, %v443_v54 }
 0x32b   : > { %v449_v56 = vpop.permute.xlu0 %448 }
 0x32d   : > { %v451_v57 = vpop.permute.xlu1 %450 }
 0x32e   : > { %v452_v60 = vsel %vm219_vm0, %v449_v56, %v451_v57  ;;  %v453_v61 = vsel %vm219_vm0, %v451_v57, %v449_v56 }
 0x32f   : > { %v457_v62 = vsel %vm1098_vm3, %v446_v58, %v453_v61  ;;  %v456_v63 = vsel %vm1094_vm2, %v447_v59, %v452_v60  ;;  %v455_v1 = vsel %vm1106_vm5, %v453_v61, %v446_v58  ;;  %v454_v2 = vsel %vm1102_vm4, %v452_v60, %v447_v59  ;;  %v493_v10 = vpop.permute.xlu0 %492 }
 0x330   : > { %528 = vrot.lane.b32.xlu1 %v457_v62, %s938_s23  ;;  %v551_v3 = vrot.slane %v457_v62, 6  ;;  %526 = vrot.lane.b32.xlu0 %v456_v63, %s938_s23  ;;  %v550_v7 = vrot.slane %v456_v63, 6  ;;  %v477_v8 = vrot.slane %v455_v1, 2  ;;  %v476_v9 = vrot.slane %v454_v2, 2 }
 0x331   : > { %v495_v12 = vpop.permute.xlu1 %494 }
 0x332   : > { %555 = vst [vmem:[#allocation2] sm:$0xc] %v551_v3  ;;  %554 = vst [vmem:[#allocation2 + $0x8] sm:$0xc] %v550_v7  ;;  %v496_v11 = vsel %vm197_vm6, %v493_v10, %v495_v12  ;;  %v497_v45 = vsel %vm197_vm6, %v495_v12, %v493_v10 }
 0x333   : > { %481 = vst [vmem:[#allocation2 + $0x10] sm:$0xc0] %v477_v8  ;;  %480 = vst [vmem:[#allocation2 + $0x28] sm:$0xc0] %v476_v9  ;;  %v509_v14 = vrot.slane %v496_v11, 6 }
 0x334   : > { %534 = vrot.lane.b32.xlu1 %v457_v62, %s939_s8  ;;  %532 = vrot.lane.b32.xlu0 %v456_v63, %s939_s8 }
 0x335   : > { %513 = vst [vmem:[#allocation2 + $0x10] sm:$0xc] %v509_v14 }
 0x338   : > { %460 = vrot.lane.b32.xlu1 %v455_v1, %s938_s23  ;;  %458 = vrot.lane.b32.xlu0 %v454_v2, %s938_s23 }
 0x33c   : > { %466 = vrot.lane.b32.xlu1 %v455_v1, %s939_s8  ;;  %464 = vrot.lane.b32.xlu0 %v454_v2, %s939_s8 }
 0x340   : > { %500 = vrot.lane.b32.xlu1 %v440_v53, %s939_s8  ;;  %498 = vrot.lane.b32.xlu0 %v438_v52, %s939_s8 }
 0x3a2   : > { %v527_v13 = vpop.permute.xlu0 %526  ;;  %v529_v15 = vpop.permute.xlu1 %528 }
 0x3a3   : > { %v530_v16 = vsel %vm197_vm6, %v527_v13, %v529_v15  ;;  %v531_v20 = vsel %vm197_vm6, %v529_v15, %v527_v13 }
 0x3a4   : > { %v543_v17 = vrot.slane %v530_v16, 4 }
 0x3a6   : > { %547 = vst [vmem:[#allocation2 + $0x10] sm:$0x30] %v543_v17  ;;  %v533_v18 = vpop.permute.xlu0 %532  ;;  %v535_v19 = vpop.permute.xlu1 %534 }
 0x3a7   : > { %v536_v21 = vsel %vm244_vm7, %v533_v18, %v535_v19  ;;  %v537_v22 = vsel %vm244_vm7, %v535_v19, %v533_v18 }
 0x3a8   : > { %v538_v23 = vsel %vm197_vm6, %v536_v21, %v531_v20  ;;  %v557_v24 = vsel %vm200_vm8, %v530_v16, %v537_v22  ;;  %558 = vst [vmem:[#allocation2 + $0x18] sm:$0x3] %v536_v21  ;;  %v941_v20 = vmov 1983009808  }
 0x3a9   : > { %v542_v25 = vrot.slane %v538_v23, 4  ;;  %559 = vst [vmem:[#allocation2 + $0x20] sm:$0x3] %v557_v24  ;;  %v663_v21 = vunpack.c.l.s4 %v941_v20 }
 0x3aa   : > { %v459_v26 = vpop.permute.xlu0 %458  ;;  %v461_v27 = vpop.permute.xlu1 %460 }
 0x3ab   : > { %546 = vst [vmem:[#allocation2 + $0x28] sm:$0x30] %v542_v25  ;;  %v462_v28 = vsel %vm197_vm6, %v459_v26, %v461_v27  ;;  %v463_v31 = vsel %vm197_vm6, %v461_v27, %v459_v26  ;;  %v664_v27 = vunpack.c.0.s8 %v663_v21 }
 0x3ac   : > { %473 = vst [vmem:[#allocation2 + $0x10] sm:$0x3] %v462_v28 }
 0x3ae   : > { %v465_v29 = vpop.permute.xlu0 %464  ;;  %v467_v30 = vpop.permute.xlu1 %466 }
 0x3af   : > { %v468_v32 = vsel %vm244_vm7, %v465_v29, %v467_v30  ;;  %v469_v33 = vsel %vm244_vm7, %v467_v30, %v465_v29  ;;  %v565_v34 = vld [vmem:[#allocation2 + $0x18] sm:$0x3] }
 0x3b0   : > { %v470_v35 = vsel %vm197_vm6, %v468_v32, %v463_v31  ;;  %v483_v36 = vsel %vm200_vm8, %v462_v28, %v469_v33  ;;  %v486_v37 = vrot.slane %v468_v32, 4  ;;  %v566_v38 = vld [vmem:[#allocation2 + $0x20] sm:$0x3]  ;;  %v569_v39 = vpack.c.bf16 %v565_v34, %v565_v34 }
 0x3b1   : > { %472 = vst [vmem:[#allocation2 + $0x28] sm:$0x3] %v470_v35  ;;  %v487_v40 = vrot.slane %v483_v36, 4  ;;  %v570_v41 = vpack.c.bf16 %v566_v38, %v566_v38  ;;  %v666_v28 = vshrl.u32 %v188_v4, 7 }
 0x3b2   : > { %490 = vst [vmem:[#allocation2 + $0x8] sm:$0x30] %v486_v37  ;;  %v499_v42 = vpop.permute.xlu0 %498  ;;  %v501_v43 = vpop.permute.xlu1 %500  ;;  %v575_v44 = vsel %vm360_vm9, %v569_v39, 0 }
 0x3b3   : > { %491 = vst [vmem:[#allocation2] sm:$0x30] %v487_v40  ;;  %v502_v46 = vsel %vm244_vm7, %v499_v42, %v501_v43  ;;  %v503_v47 = vsel %vm244_vm7, %v501_v43, %v499_v42  ;;  %771 = vmatprep.subr.msk.bf16.mxu1 %vm360_vm9, %v570_v41  ;;  %v562_v54 = vld [vmem:[#allocation2 + $0x10] sm:$0xff]  ;;  %v667_v31 = vsub.s32 %v664_v27, %v666_v28 }
 0x3b4   : > { %v504_v48 = vsel %vm197_vm6, %v502_v46, %v497_v45  ;;  %v517_v49 = vsel %vm200_vm8, %v496_v11, %v503_v47  ;;  %v520_v50 = vrot.slane %v502_v46, 2  ;;  %593 = vmatpush1.bf16.msra.mxu1 %v575_v44 }
 0x3b5   : > { %v508_v51 = vrot.slane %v504_v48, 6  ;;  %v521_v52 = vrot.slane %v517_v49, 2 }
 0x3b6   : > { %524 = vst [vmem:[#allocation2 + $0x8] sm:$0xc0] %v520_v50 }
 0x3b7   : > { %512 = vst [vmem:[#allocation2 + $0x28] sm:$0xc] %v508_v51  ;;  %525 = vst [vmem:[#allocation2] sm:$0xc0] %v521_v52 }
 0x3bd   : > { %v563_v53 = vld [vmem:[#allocation2 + $0x8] sm:$0xff] }
 0x3be   : > { %v564_v55 = vld [vmem:[#allocation2] sm:$0xff]  ;;  %v561_v56 = vld [vmem:[#allocation2 + $0x28] sm:$0xff] }
 0x3bf   : > { %v568_v57 = vpack.c.bf16 %v564_v55, %v562_v54  ;;  %v567_v58 = vpack.c.bf16 %v563_v53, %v561_v56 }
 0x3c1   : > { %594 = vmatprep.subr.bf16.mxu1 %v568_v57 }
 0x3c2   : > { %595 = vmatpush1.bf16.msra.mxu1 %v567_v58 }
 0x3c5   : > { %772 = vmatmul.mubr.msk.bf16.vlgmr.msra.gmra.mxu1 %vm356_vm10, %v560_v5 }
 0x485   : > { %v614_v6 = vpop.f32.mrf.mxu1 }
 0x486   : > { %v627_v59 = vmul.f32 %v614_v6, %v614_v6  ;;  %v621_v62 = vsel %vm408_vm11, %v614_v6, 0.0 }
 0x487   : > { %v616_v60 = vpop.f32.mrf.mxu1 }
 0x488   : > { %v628_v61 = vmul.f32 %v616_v60, %v616_v60  ;;  %v622_v63 = vsel %vm408_vm11, %v616_v60, 0.0  ;;  %v629_v3 = vsel %vm408_vm11, %v627_v59, 0.0 }
 0x489   : > { %v618_v1 = vpop.f32.mrf.mxu1  ;;  %v623_v2 = vadd.f32 %v622_v63, %v621_v62 }
 0x48a   : > { %v630_v7 = vsel %vm408_vm11, %v628_v61, 0.0 }
 0x48b   : > { %624 = vadd.xlane.f32.xlu0 %v623_v2  ;;  %v619_v8 = vpop.f32.mrf.mxu1  ;;  %v631_v9 = vadd.f32 %v630_v7, %v629_v3 }
 0x48d   : > { %632 = vadd.xlane.f32.xlu1 %v631_v9 }
 0x514   : > { %v625_v10 = vpop.xlane.xlu0 %624 }
 0x515   : > { %v626_v12 = vmul.f32 0.00390625, %v625_v10 }
 0x516   : > { %v633_v11 = vpop.xlane.xlu1 %632 }
 0x517   : > { %v634_v14 = vmul.f32 0.00390625, %v633_v11  ;;  %v635_v13 = vmul.f32 %v626_v12, %v626_v12  ;;  %v638_v18 = vsub.f32 %v614_v6, %v626_v12  ;;  %v639_v19 = vsub.f32 %v616_v60, %v626_v12 }
 0x519   : > { %v636_v15 = vsub.f32 %v634_v14, %v635_v13 }
 0x51b   : > { %v637_v16 = vmax.f32 %v636_v15, 0.0 }
 0x51d   : > { %v640_v17 = vadd.f32 1e-05, %v637_v16 }
 0x51f   : > { %839 = vrsqrt.f32 %v640_v17 }
 0x52c   : > { %v840_v22 = vpop.eup %839 }
 0x52d   : > { %v642_v23 = vmul.f32 %v840_v22, %v638_v18  ;;  %v643_v24 = vmul.f32 %v840_v22, %v639_v19 }
 0x52f   : > { %v644_v25 = vmax.f32 %v642_v23, 0.0  ;;  %v645_v26 = vmax.f32 %v643_v24, 0.0 }
 0x531   : > { %v648_v29 = vcombine.low %v644_v25, %v645_v26 }
 0x533   : > { %v649_v30 = vrot.slane %v648_v29, 6 }
 0x535   : > { %v651_v32 = vadd.f32 %v649_v30, %v1073_v0 }
 0x537   : > { %v668_v33 = vrot.slane %v651_v32, %v667_v31 }
 0x539   : > { %v669_v34 = vcombine.high %v668_v33, %v668_v33 }
 0x53b   : > { %774 = vst [vmem:[%s1197_s11 + $0x4] sm:$0xf] %v669_v34 }
 0x53c   : > { %882 = shalt.err (!%p879_p10)
}
 0x53d   : > { %s883_s6 = scalar_lea.hbm %s1284_s28, 128  ;;  %s887_s9 = scalar_lea.hbm %s1333_s3, 256 }
 0x53e   : > { %p884_p2 = scmp.ne.s32.totalorder %s1284_s28, %s883_s6  ;;  %p888_p7 = scmp.lt.s32.totalorder %s1284_s28, %s1333_s3 }
 0x53f   : > { %p889_p0 = scmp.lt.s32.totalorder %s887_s9, %s883_s6 }
 0x540   : > { %p885_p4 = pnand %p884_p2, %p1352_p12 }
 0x541   : > { %p890_p6 = por %p889_p0, %p888_p7 }
 0x542   : > { %p886_p9 = pneg %p885_p4 }
 0x544   : > { %p891_p11 = pnand %p890_p6, %p886_p9 }
 0x546   : > { %894 = shalt.err (!%p891_p11)
}
 0x547   : > { %s943_s17 = smov 64   ;;  %s944_s19 = smov 4  }
 0x548   : > { %784 = dma.vmem_to_hbm [thread:$0]  (%p1352_p12), %s1286_s22, 128, %s1284_s28, %s674_s30, %s943_s17, %s943_s17, %s944_s19  }
 0x549 PF: > { %s702_s20 = sand.u32 1, %s921_s12   ;;  %p1353_p13 = scmp.ne.s32.totalorder %s1339_s25, 0 }
 0x54a   : > { %p1354_p1 = scmp.ge.s32.totalorder %s933_s15, 2  ;;  %s703_s26 = scalar_lea.sflag [#allocation5], %s702_s20 }
 0x54c   : > { %p791_p3 = pnand %p1354_p1, %p1353_p13 }
 0x54e   : > { %p792_p5 = pneg %p791_p3 }
 0x550   : > { %916 = dma.done.wait (%p792_p5), %s703_s26, 128  }
 0x551   : > { %918 = vsyncadd (%p792_p5), %s703_s26, 4294967168  ;;  %p16_p8 = scmp.ge.s32.totalorder %s990_s18, 4   ;;  %s1355_s12 = smov %s925_s13 }
 0x552   : > { %s1356_s13 = smov %s929_s14  ;;  %s1357_s14 = smov %s1002_s21 }
 0x553   : > { %s1358_s15 = smov %s990_s18  ;;  %18 = sbr.rel (!%p16_p8) target bundleno = 5 (0x5), region = 78 }
 0x558   :  { %708 = vsyncpa [#allocation4], 1 }
 0x559   :  { %710 = vsyncpa [#allocation4 + $0x1], 1 }
 0x55a   :  { %711 = vsyncpa [#allocation5], 1 }
 0x55b   :  { %713 = vsyncpa [#allocation5 + $0x1], 1 }

</bundles_post_ra>
